<compile_context>
chip_gen: v5e
topology: v5e:2x2
jax: 0.10.0
libtpu: 0.0.40
codegen_flags: <defaults>
</compile_context>

<pallas_src>
import math
import functools

import jax
import jax.numpy as jnp
from jax import lax
from jax.experimental import pallas as pl
from jax.experimental.pallas import tpu as pltpu


# --------------------------------------------------------------------------- #
# helpers
# --------------------------------------------------------------------------- #

def _pick_tile(dim, target, align):
    """Largest tile <= target that divides `dim` and is a multiple of `align`,
    falling back to the full dim (which always satisfies the (8,128) rule)."""
    if dim <= target:
        return dim
    t = (target // align) * align
    while t >= align:
        if dim % t == 0:
            return t
        t -= align
    return dim


def _rotate_half(x):
    """rotate_half on a (rows, hd) block using static lane slices."""
    half = x.shape[-1] // 2
    return jnp.concatenate([-x[:, half:], x[:, :half]], axis=-1)


# --------------------------------------------------------------------------- #
# fused q/k/v projection:  qkv = x @ W_qkv.T  (W in nn.Linear (out, in) layout)
# --------------------------------------------------------------------------- #

def _matmul_kernel(x_ref, w_ref, o_ref, acc_ref, *, mxu_dtype):
    @pl.when(pl.program_id(2) == 0)
    def _():
        acc_ref[...] = jnp.zeros(acc_ref.shape, acc_ref.dtype)

    x = x_ref[...].astype(mxu_dtype)          # (tm, tk)
    w = w_ref[...].astype(mxu_dtype)          # (tn, tk)  -- native nn.Linear layout
    acc_ref[...] += lax.dot_general(
        x, w, (((1,), (1,)), ((), ())), preferred_element_type=jnp.float32)

    @pl.when(pl.program_id(2) == pl.num_programs(2) - 1)
    def _():
        o_ref[...] = acc_ref[...].astype(o_ref.dtype)


def _linear_nt(x2d, w, *, mxu_dtype, tm=256, tn=512, tk=512):
    """y = x2d @ w.T with w in (N, K) layout; K contracted in-kernel."""
    M, K = x2d.shape
    N = w.shape[0]
    btm = _pick_tile(M, tm, 8)
    btn = _pick_tile(N, tn, 128)
    btk = _pick_tile(K, tk, 128)
    grid = (M // btm, N // btn, K // btk)
    kernel = functools.partial(_matmul_kernel, mxu_dtype=mxu_dtype)
    return pl.pallas_call(
        kernel,
        grid=grid,
        in_specs=[
            pl.BlockSpec((btm, btk), lambda i, j, k: (i, k)),
            pl.BlockSpec((btn, btk), lambda i, j, k: (j, k)),
        ],
        out_specs=pl.BlockSpec((btm, btn), lambda i, j, k: (i, j)),
        out_shape=jax.ShapeDtypeStruct((M, N), x2d.dtype),
        scratch_shapes=[pltpu.VMEM((btm, btn), jnp.float32)],
        compiler_params=pltpu.CompilerParams(
            dimension_semantics=("parallel", "parallel", "arbitrary")),
    )(x2d, w)


# --------------------------------------------------------------------------- #
# output projection, contracted per-head directly from (B, nq, S, hd)
# (no (B,nq,S,hd) -> (B,S,nq*hd) transpose needed)
# --------------------------------------------------------------------------- #

def _oproj_kernel(x_ref, w_ref, o_ref, acc_ref, *, mxu_dtype):
    h = pl.program_id(3)

    @pl.when(h == 0)
    def _():
        acc_ref[...] = jnp.zeros(acc_ref.shape, acc_ref.dtype)

    x = x_ref[0, 0].astype(mxu_dtype)         # (btm, hd) rows of head h
    w = w_ref[...].astype(mxu_dtype)          # (btn, hd) columns of Wo for head h
    acc_ref[...] += lax.dot_general(
        x, w, (((1,), (1,)), ((), ())), preferred_element_type=jnp.float32)

    @pl.when(h == pl.num_programs(3) - 1)
    def _():
        o_ref[0] = acc_ref[...].astype(o_ref.dtype)


def _o_proj(attn_out, wo, out_dtype, *, mxu_dtype, tm=256, tn=512):
    """out[b,s,:] = sum_h attn_out[b,h,s,:] @ wo[:, h*hd:(h+1)*hd].T"""
    B, nq, S, hd = attn_out.shape
    H = wo.shape[0]
    btm = _pick_tile(S, tm, 8)
    btn = _pick_tile(H, tn, 128)
    grid = (B, S // btm, H // btn, nq)
    kernel = functools.partial(_oproj_kernel, mxu_dtype=mxu_dtype)
    return pl.pallas_call(
        kernel,
        grid=grid,
        in_specs=[
            pl.BlockSpec((1, 1, btm, hd), lambda b, i, j, h: (b, h, i, 0)),
            pl.BlockSpec((btn, hd), lambda b, i, j, h: (j, h)),
        ],
        out_specs=pl.BlockSpec((1, btm, btn), lambda b, i, j, h: (b, i, j)),
        out_shape=jax.ShapeDtypeStruct((B, S, H), out_dtype),
        scratch_shapes=[pltpu.VMEM((btm, btn), jnp.float32)],
        compiler_params=pltpu.CompilerParams(
            dimension_semantics=("parallel", "parallel", "parallel", "arbitrary")),
    )(attn_out, wo)


# --------------------------------------------------------------------------- #
# RoPE + head split + layout change (once per element, outside the flash loop)
# --------------------------------------------------------------------------- #

def _rope_split_transpose_kernel(qkv_ref, cos_ref, sin_ref,
                                 qo_ref, ko_ref, vo_ref, *, nq, nk, hd, scale):
    # qkv_ref: (tr, (nq+2nk)*hd) row-tile of the fused projection output
    # cos/sin: (tr, hd) f32 rotary tables for these rows
    # outputs: head-major (1, heads, tr, hd) tiles
    cos = cos_ref[...]
    sin = sin_ref[...]
    cos_q = cos * scale                       # fold 1/sqrt(hd) into the q tables
    sin_q = sin * scale

    def rope(x, c, s):
        return x * c + _rotate_half(x) * s

    for h in range(nq):                       # unrolled; static 128-aligned lane slices
        xq = qkv_ref[:, h * hd:(h + 1) * hd].astype(jnp.float32)
        qo_ref[0, h] = rope(xq, cos_q, sin_q).astype(qo_ref.dtype)
    for h in range(nk):
        xk = qkv_ref[:, (nq + h) * hd:(nq + h + 1) * hd].astype(jnp.float32)
        ko_ref[0, h] = rope(xk, cos, sin).astype(ko_ref.dtype)
        vo_ref[0, h] = qkv_ref[:, (nq + nk + h) * hd:(nq + nk + h + 1) * hd]


# --------------------------------------------------------------------------- #
# attention kernels
# --------------------------------------------------------------------------- #

def _flash_attn_kernel(q_ref, k_ref, v_ref, mask_ref, o_ref,
                       m_ref, l_ref, acc_ref, *, mxu_dtype, exp_dtype, causal):
    # q block:   (1, n_rep, tq, hd)   pre-rotated, pre-scaled; resident across ki
    # k/v block: (1, 1, tkv, hd)      pre-rotated
    # mask:      (1, 1, tq, tkv)      additive
    qi = pl.program_id(2)
    ki = pl.program_id(3)
    tq = q_ref.shape[2]
    tkv = k_ref.shape[2]

    @pl.when(ki == 0)
    def _():
        m_ref[...] = jnp.full(m_ref.shape, -jnp.inf, dtype=m_ref.dtype)
        l_ref[...] = jnp.zeros(l_ref.shape, l_ref.dtype)
        acc_ref[...] = jnp.zeros(acc_ref.shape, acc_ref.dtype)

    def body():
        q = q_ref[0].astype(mxu_dtype)                      # (n_rep, tq, hd)
        k = k_ref[0, 0].astype(mxu_dtype)                   # (tkv, hd)
        s = jnp.einsum("rqd,kd->rqk", q, k,
                       preferred_element_type=jnp.float32)  # (n_rep, tq, tkv)
        s = s + mask_ref[0].astype(jnp.float32)             # broadcast over n_rep

        m_prev = m_ref[...]
        m_new = jnp.maximum(m_prev, jnp.max(s, axis=-1, keepdims=True))
        alpha = jnp.exp(m_prev - m_new)
        p = jnp.exp((s - m_new).astype(exp_dtype))          # bf16 EUP on perf path
        l_ref[...] = alpha * l_ref[...] + jnp.sum(
            p.astype(jnp.float32), axis=-1, keepdims=True)
        acc_ref[...] = alpha * acc_ref[...] + jnp.einsum(
            "rqk,kd->rqd", p.astype(mxu_dtype), v_ref[0, 0].astype(mxu_dtype),
            preferred_element_type=jnp.float32)
        m_ref[...] = m_new

    if causal:
        # Skip kv tiles entirely above the diagonal (fully masked under a
        # causal additive mask): m/l/acc are simply left unchanged.
        @pl.when(ki * tkv < (qi + 1) * tq)
        def _():
            body()
    else:
        body()

    @pl.when(ki == pl.num_programs(3) - 1)
    def _():
        o_ref[0] = (acc_ref[...] / l_ref[...]).astype(o_ref.dtype)


def _attn_with_weights_kernel(q_ref, k_ref, v_ref, mask_ref, o_ref, w_ref,
                              *, mxu_dtype):
    # Debug/parity path: also materializes (B, nq, S, S) weights.  Full-S K/V
    # blocks -> intended for small S only.
    q = q_ref[0].astype(mxu_dtype)                 # (n_rep, tq, hd)
    k = k_ref[0, 0].astype(mxu_dtype)              # (S, hd)
    v = v_ref[0, 0].astype(mxu_dtype)
    s = jnp.einsum("rqd,kd->rqk", q, k, preferred_element_type=jnp.float32)
    s = s + mask_ref[0].astype(jnp.float32)

    m = jnp.max(s, axis=-1, keepdims=True)
    e = jnp.exp(s - m)
    p = e / jnp.sum(e, axis=-1, keepdims=True)     # exact normalization
    w_ref[0] = p.astype(w_ref.dtype)
    o_ref[0] = jnp.einsum("rqk,kd->rqd", p.astype(mxu_dtype), v,
                          preferred_element_type=jnp.float32).astype(o_ref.dtype)


# --------------------------------------------------------------------------- #
# module wrapper
# --------------------------------------------------------------------------- #

def prepare_gemma_attention_params(params, mxu_dtype=jnp.bfloat16):
    """Build the fused projection weight (and cast) once per model."""
    w_qkv = jnp.concatenate([params["wq"], params["wk"], params["wv"]], axis=0)
    return {"w_qkv": w_qkv.astype(mxu_dtype), "wo": params["wo"].astype(mxu_dtype)}


def gemma_attention_forward(hidden_states, attention_mask, position_ids, params, cfg,
                            *, mxu_dtype=jnp.bfloat16, return_attn_weights=False,
                            is_causal=True):
    """GemmaAttention.forward (eval mode, empty KV cache).

    is_causal=True enables skipping kv tiles above the diagonal; exact as long
    as attention_mask is at least as restrictive as causal (the module's use
    case).  Pass is_causal=False for arbitrary masks.
    """
    B, S, H = hidden_states.shape
    nq = cfg["num_attention_heads"]
    nk = cfg["num_key_value_heads"]
    hd = cfg["head_dim"]
    n_rep = nq // nk

    if attention_mask.shape != (B, 1, S, S):
        raise ValueError(f"attention_mask must be (B, 1, S, S); got {attention_mask.shape}")

    use_bf16 = jnp.dtype(mxu_dtype) == jnp.dtype(jnp.bfloat16)
    act_dtype = jnp.bfloat16 if use_bf16 else hidden_states.dtype
    exp_dtype = jnp.bfloat16 if use_bf16 else jnp.float32

    if "w_qkv" not in params:
        # TODO(synk): in a real model the fused/cast weights are built once at init.
        params = prepare_gemma_attention_params(params, mxu_dtype)

    # ---- fused q/k/v projection (bf16 streaming on the perf path) ----
    x2d = hidden_states.reshape(B * S, H).astype(act_dtype)
    qkv = _linear_nt(x2d, params["w_qkv"], mxu_dtype=mxu_dtype)   # (B*S, (nq+2nk)*hd)

    # ---- rotary tables (f32) ----
    inv_freq = 1.0 / (
        cfg["rope_theta"] ** (jnp.arange(0, hd, 2, dtype=jnp.float32) / hd))
    freqs = position_ids.astype(jnp.float32)[:, :, None] * inv_freq[None, None, :]
    emb = jnp.concatenate([freqs, freqs], axis=-1)                # (B, S, hd)
    cos = jnp.cos(emb).reshape(B * S, hd)
    sin = jnp.sin(emb).reshape(B * S, hd)

    # ---- RoPE + head split + (B,S,h,d) -> (B,h,S,d) layout change, in-kernel ----
    tr = _pick_tile(S, 128, 8)
    rpb = S // tr                                                 # row tiles per batch
    rope_kernel = functools.partial(
        _rope_split_transpose_kernel, nq=nq, nk=nk, hd=hd, scale=1.0 / math.sqrt(hd))
    q_rot, k_rot, v_t = pl.pallas_call(
        rope_kernel,
        grid=(B * rpb,),
        in_specs=[
            pl.BlockSpec((tr, (nq + 2 * nk) * hd), lambda r: (r, 0)),
            pl.BlockSpec((tr, hd), lambda r: (r, 0)),
            pl.BlockSpec((tr, hd), lambda r: (r, 0)),
        ],
        out_specs=[
            pl.BlockSpec((1, nq, tr, hd), lambda r: (r // rpb, 0, r % rpb, 0)),
            pl.BlockSpec((1, nk, tr, hd), lambda r: (r // rpb, 0, r % rpb, 0)),
            pl.BlockSpec((1, nk, tr, hd), lambda r: (r // rpb, 0, r % rpb, 0)),
        ],
        out_shape=[
            jax.ShapeDtypeStruct((B, nq, S, hd), qkv.dtype),
            jax.ShapeDtypeStruct((B, nk, S, hd), qkv.dtype),
            jax.ShapeDtypeStruct((B, nk, S, hd), qkv.dtype),
        ],
        compiler_params=pltpu.CompilerParams(dimension_semantics=("parallel",)),
    )(qkv, cos, sin)

    # ---- attention ----
    tq = _pick_tile(S, max(128, 512 // n_rep), 8)   # bound R = n_rep*tq (GQA)
    tkv = _pick_tile(S, 256, 128)

    if not return_attn_weights:
        kernel = functools.partial(_flash_attn_kernel, mxu_dtype=mxu_dtype,
                                   exp_dtype=exp_dtype, causal=is_causal)
        grid = (B, nk, S // tq, S // tkv)
        attn_out = pl.pallas_call(
            kernel,
            grid=grid,
            in_specs=[
                pl.BlockSpec((1, n_rep, tq, hd), lambda b, g, qi, ki: (b, g, qi, 0)),
                pl.BlockSpec((1, 1, tkv, hd),    lambda b, g, qi, ki: (b, g, ki, 0)),
                pl.BlockSpec((1, 1, tkv, hd),    lambda b, g, qi, ki: (b, g, ki, 0)),
                # TODO(synk): for pure-causal callers the mask could be generated
                # in-kernel from iota to avoid streaming B*nk*S^2 floats from HBM.
                pl.BlockSpec((1, 1, tq, tkv),    lambda b, g, qi, ki: (b, 0, qi, ki)),
            ],
            out_specs=pl.BlockSpec((1, n_rep, tq, hd),
                                   lambda b, g, qi, ki: (b, g, qi, 0)),
            out_shape=jax.ShapeDtypeStruct((B, nq, S, hd), qkv.dtype),
            scratch_shapes=[
                pltpu.VMEM((n_rep, tq, 1), jnp.float32),    # running max
                pltpu.VMEM((n_rep, tq, 1), jnp.float32),    # running sum
                pltpu.VMEM((n_rep, tq, hd), jnp.float32),   # output accumulator
            ],
            compiler_params=pltpu.CompilerParams(
                dimension_semantics=("parallel", "parallel", "parallel", "arbitrary"),
                vmem_limit_bytes=32 * 1024 * 1024),
        )(q_rot, k_rot, v_t, attention_mask)
        attn_w = None
    else:
        kernel = functools.partial(_attn_with_weights_kernel, mxu_dtype=mxu_dtype)
        attn_out, attn_w = pl.pallas_call(
            kernel,
            grid=(B, nk, S // tq),
            in_specs=[
                pl.BlockSpec((1, n_rep, tq, hd), lambda b, g, qi: (b, g, qi, 0)),
                pl.BlockSpec((1, 1, S, hd),      lambda b, g, qi: (b, g, 0, 0)),
                pl.BlockSpec((1, 1, S, hd),      lambda b, g, qi: (b, g, 0, 0)),
                pl.BlockSpec((1, 1, tq, S),      lambda b, g, qi: (b, 0, qi, 0)),
            ],
            out_specs=[
                pl.BlockSpec((1, n_rep, tq, hd), lambda b, g, qi: (b, g, qi, 0)),
                pl.BlockSpec((1, n_rep, tq, S),  lambda b, g, qi: (b, g, qi, 0)),
            ],
            out_shape=[
                jax.ShapeDtypeStruct((B, nq, S, hd), qkv.dtype),
                jax.ShapeDtypeStruct((B, nq, S, S), hidden_states.dtype),
            ],
            compiler_params=pltpu.CompilerParams(
                dimension_semantics=("parallel", "parallel", "parallel")),
        )(q_rot, k_rot, v_t, attention_mask)

    # ---- output projection straight from the head-major layout ----
    out = _o_proj(attn_out, params["wo"], hidden_states.dtype, mxu_dtype=mxu_dtype)
    # TODO(synk): attention_dropout only applies in training mode; eval -> identity.
    return out, attn_w


# --------------------------------------------------------------------------- #
# pure JAX reference (mirrors the PyTorch module)
# --------------------------------------------------------------------------- #

def _reference(hidden_states, attention_mask, position_ids, params, cfg):
    B, S, H = hidden_states.shape
    nq, nk, hd = cfg["num_attention_heads"], cfg["num_key_value_heads"], cfg["head_dim"]
    n_rep = nq // nk
    hp = lax.Precision.HIGHEST
    x2d = hidden_states.reshape(B * S, H)

    q = jnp.matmul(x2d, params["wq"].T, precision=hp).reshape(B, S, nq, hd).transpose(0, 2, 1, 3)
    k = jnp.matmul(x2d, params["wk"].T, precision=hp).reshape(B, S, nk, hd).transpose(0, 2, 1, 3)
    v = jnp.matmul(x2d, params["wv"].T, precision=hp).reshape(B, S, nk, hd).transpose(0, 2, 1, 3)

    inv_freq = 1.0 / (cfg["rope_theta"] ** (jnp.arange(0, hd, 2, dtype=jnp.float32) / hd))
    freqs = position_ids.astype(jnp.float32)[:, :, None] * inv_freq[None, None, :]
    emb = jnp.concatenate([freqs, freqs], axis=-1)
    cos = jnp.cos(emb)[:, None, :, :]
    sin = jnp.sin(emb)[:, None, :, :]

    def rot_half(x):
        x1, x2 = x[..., : hd // 2], x[..., hd // 2:]
        return jnp.concatenate([-x2, x1], axis=-1)

    q = q * cos + rot_half(q) * sin
    k = k * cos + rot_half(k) * sin

    k = jnp.repeat(k, n_rep, axis=1)
    v = jnp.repeat(v, n_rep, axis=1)

    scores = jnp.einsum("bhqd,bhkd->bhqk", q, k, precision=hp) / math.sqrt(hd) + attention_mask
    w = jax.nn.softmax(scores.astype(jnp.float32), axis=-1)
    o = jnp.einsum("bhqk,bhkd->bhqd", w, v, precision=hp)
    o = o.transpose(0, 2, 1, 3).reshape(B, S, nq * hd)
    return jnp.matmul(o, params["wo"].T, precision=hp), w


# --------------------------------------------------------------------------- #
# main
# --------------------------------------------------------------------------- #

if __name__ == "__main__":
    cfg = dict(
        hidden_size=32,
        num_attention_heads=4,
        num_key_value_heads=2,
        head_dim=128,          # lane-dense head dim (real Gemma uses 256)
        rope_theta=10000.0,
    )
    B, S, H = 2, 8, cfg["hidden_size"]
    nq, nk, hd = cfg["num_attention_heads"], cfg["num_key_value_heads"], cfg["head_dim"]

    key = jax.random.PRNGKey(0)
    k_x, k_q, k_k, k_v, k_o = jax.random.split(key, 5)

    # nn.Linear weight layout: (out_features, in_features), no bias
    params = {
        "wq": 0.05 * jax.random.normal(k_q, (nq * hd, H), dtype=jnp.float32),
        "wk": 0.05 * jax.random.normal(k_k, (nk * hd, H), dtype=jnp.float32),
        "wv": 0.05 * jax.random.normal(k_v, (nk * hd, H), dtype=jnp.float32),
        "wo": 0.05 * jax.random.normal(k_o, (H, nq * hd), dtype=jnp.float32),
    }

    hidden_states = jax.random.normal(k_x, (B, S, H), dtype=jnp.float32)
    position_ids = jnp.broadcast_to(jnp.arange(S, dtype=jnp.int32)[None, :], (B, S))

    # additive causal mask, shape (B, 1, S, S): 0 where attendable, -1e9 otherwise
    causal = jnp.tril(jnp.ones((S, S), dtype=bool))
    attention_mask = jnp.where(causal, 0.0, -1e9).astype(jnp.float32)[None, None]
    attention_mask = jnp.broadcast_to(attention_mask, (B, 1, S, S))

    ref_out, ref_w = _reference(hidden_states, attention_mask, position_ids, params, cfg)

    # fused / cast weights are built once (hoisted out of the forward path)
    params_f32 = prepare_gemma_attention_params(params, jnp.float32)
    params_bf16 = prepare_gemma_attention_params(params, jnp.bfloat16)

    # 1) f32-MXU path that also returns attention weights (full module signature)
    out32, w32 = gemma_attention_forward(
        hidden_states, attention_mask, position_ids, params_f32, cfg,
        mxu_dtype=jnp.float32, return_attn_weights=True)
    out32 = jax.block_until_ready(out32)
    w32 = jax.block_until_ready(w32)
    assert out32.shape == (B, S, H) and w32.shape == (B, nq, S, S)
    assert jnp.allclose(out32, ref_out, atol=5e-3, rtol=5e-3)
    assert jnp.allclose(w32, ref_w, atol=5e-3, rtol=5e-3)

    # 2) flash path (no weights materialized), f32 MXU, causal tile skipping
    out_flash, w_none = gemma_attention_forward(
        hidden_states, attention_mask, position_ids, params_f32, cfg,
        mxu_dtype=jnp.float32)
    out_flash = jax.block_until_ready(out_flash)
    assert w_none is None
    assert jnp.allclose(out_flash, ref_out, atol=5e-3, rtol=5e-3)

    # 3) default perf path: flash + bf16 streaming + bf16 exp, f32 accumulation
    out_bf16, _ = gemma_attention_forward(
        hidden_states, attention_mask, position_ids, params_bf16, cfg)
    out_bf16 = jax.block_until_ready(out_bf16)
    assert jnp.allclose(out_bf16, ref_out, atol=5e-2, rtol=5e-2)

    print("KERNEL_OK")
</pallas_src>

<mosaic_0001>
module attributes {stable_mosaic.version = 11 : i64} {
  func.func @_matmul_kernel(%arg0: i32, %arg1: i32, %arg2: i32, %arg3: memref<16x32xf32, #tpu.memory_space<vmem>>, %arg4: memref<512x32xf32, #tpu.memory_space<vmem>>, %arg5: memref<16x512xf32, #tpu.memory_space<vmem>>, %arg6: memref<16x512xf32, #tpu.memory_space<vmem>>) attributes {dimension_semantics = [#tpu.dimension_semantics<parallel>, #tpu.dimension_semantics<parallel>, #tpu.dimension_semantics<arbitrary>], iteration_bounds = array<i64: 1, 2, 1>, scalar_prefetch = 0 : i64, scratch_operands = 1 : i64, tpu.core_type = #tpu.core_type<tc>, window_params = [{transform_indices = @transform_0, window_bounds = array<i64: 16, 32>}, {transform_indices = @transform_1, window_bounds = array<i64: 512, 32>}, {transform_indices = @transform_2, window_bounds = array<i64: 16, 512>}]} {
    %c0_i32 = arith.constant 0 : i32
    %0 = arith.cmpi eq, %arg2, %c0_i32 : i32
    %1 = arith.extui %0 : i1 to i32
    %c0_i32_0 = arith.constant 0 : i32
    %2 = arith.cmpi ne, %1, %c0_i32_0 : i32
    scf.if %2 {
      %cst_10 = arith.constant 0.000000e+00 : f32
      %12 = vector.broadcast %cst_10 : f32 to vector<16x512xf32>
      %c0_11 = arith.constant 0 : index
      %c0_12 = arith.constant 0 : index
      %13 = vector.load %arg6[%c0_11, %c0_12] : memref<16x512xf32, #tpu.memory_space<vmem>>, vector<16x512xf32>
      tpu.vector_store %arg6[%c0_11, %c0_12], %12 {strides = array<i32>} : memref<16x512xf32, #tpu.memory_space<vmem>>, vector<16x512xf32>,
    } else {
    }
    %c0 = arith.constant 0 : index
    %c0_1 = arith.constant 0 : index
    %3 = vector.load %arg3[%c0, %c0_1] : memref<16x32xf32, #tpu.memory_space<vmem>>, vector<16x32xf32>
    %c0_2 = arith.constant 0 : index
    %c0_3 = arith.constant 0 : index
    %4 = vector.load %arg4[%c0_2, %c0_3] : memref<512x32xf32, #tpu.memory_space<vmem>>, vector<512x32xf32>
    %c0_4 = arith.constant 0 : index
    %c0_5 = arith.constant 0 : index
    %5 = vector.load %arg6[%c0_4, %c0_5] : memref<16x512xf32, #tpu.memory_space<vmem>>, vector<16x512xf32>
    %cst = arith.constant dense<0.000000e+00> : vector<16x512xf32>
    %6 = tpu.matmul %3, %4, %cst {dimension_numbers = #tpu.dot_dimension_numbers<[1], [1], [0], [0], [0, 0, 1, 0], [], []>} : vector<16x32xf32>, vector<512x32xf32>, vector<16x512xf32> -> vector<16x512xf32>
    %7 = arith.addf %5, %6 : vector<16x512xf32>
    %c0_6 = arith.constant 0 : index
    %c0_7 = arith.constant 0 : index
    %8 = vector.load %arg6[%c0_6, %c0_7] : memref<16x512xf32, #tpu.memory_space<vmem>>, vector<16x512xf32>
    tpu.vector_store %arg6[%c0_6, %c0_7], %7 {strides = array<i32>} : memref<16x512xf32, #tpu.memory_space<vmem>>, vector<16x512xf32>,
    %c0_i32_8 = arith.constant 0 : i32
    %9 = arith.cmpi eq, %arg2, %c0_i32_8 : i32
    %10 = arith.extui %9 : i1 to i32
    %c0_i32_9 = arith.constant 0 : i32
    %11 = arith.cmpi ne, %10, %c0_i32_9 : i32
    scf.if %11 {
      %c0_10 = arith.constant 0 : index
      %c0_11 = arith.constant 0 : index
      %12 = vector.load %arg6[%c0_10, %c0_11] : memref<16x512xf32, #tpu.memory_space<vmem>>, vector<16x512xf32>
      %c0_12 = arith.constant 0 : index
      %c0_13 = arith.constant 0 : index
      %13 = vector.load %arg5[%c0_12, %c0_13] : memref<16x512xf32, #tpu.memory_space<vmem>>, vector<16x512xf32>
      tpu.vector_store %arg5[%c0_12, %c0_13], %12 {strides = array<i32>} : memref<16x512xf32, #tpu.memory_space<vmem>>, vector<16x512xf32>,
    } else {
    }
    return
  }
  func.func @transform_0(%arg0: i32, %arg1: i32, %arg2: i32) -> (i32, i32) {
    %c0_i32 = arith.constant 0 : i32
    return %arg0, %arg2 : i32, i32
  }
  func.func @transform_1(%arg0: i32, %arg1: i32, %arg2: i32) -> (i32, i32) {
    %c0_i32 = arith.constant 0 : i32
    return %arg1, %arg2 : i32, i32
  }
  func.func @transform_2(%arg0: i32, %arg1: i32, %arg2: i32) -> (i32, i32) {
    %c0_i32 = arith.constant 0 : i32
    return %arg0, %arg1 : i32, i32
  }
}

</mosaic_0001>

<bundles_post_ra>
// kernel: tpu_custom_call.1
= control target key start
LH: loop header
LB: loop body
LE: loop exit
PB: predicated region body
PF: predicated region fallthrough
CT: control target
= control target key end

     0   :  { %7 = vsyncpa [#allocation4], 0  ;;  %s1222_s0 = inlined_call_operand.vmem [shape: f32[16,32], index: 0, kind: input, shape index: {}]   ;;  %s1223_s1 = inlined_call_operand.vmem [shape: f32[1024,32], index: 1, kind: input, shape index: {}]   ;;  %s1224_s2 = inlined_call_operand.hbm [shape: f32[16,1024], index: 2, kind: output, shape index: {}]  }
   0x1   :  { %9 = vsyncpa [#allocation4 + $0x1], 0  ;;  %s982_s9 = smov 0   ;;  %s984_s10 = smov 0  }
   0x2   :  { %s986_s11 = smov 0   ;;  %s988_s12 = smov 0  }
   0x3   :  { %s990_s13 = smov 0   ;;  %s992_s14 = smov 0  }
   0x4 LB: > { %s739_s15 = sadd.s32 4294967295, %s962_s14   ;;  %s740_s16 = sadd.s32 4294967294, %s962_s14   ;;  %s962_s14 = sphi %s992_s14, %s15_s14   ;;  %s958_s13 = sphi %s990_s13, %s1231_s13   ;;  %s954_s12 = sphi %s988_s12, %s1230_s12   ;;  %s950_s11 = sphi %s986_s11, %s1229_s11   ;;  %s946_s10 = sphi %s984_s10, %s1228_s10   ;;  %s942_s9 = sphi %s982_s9, %s1227_s9  }
   0x5   : > { %s30_s17 = sadd.s32 1, %s958_s13  ;;  %s99_s18 = sadd.s32 1, %s950_s11 }
   0x6   : > { %p32_p0 = scmp.ge.s32.totalorder %s30_s17, 2  ;;  %p109_p1 = scmp.ne.s32.totalorder %s950_s11, %s946_s10 }
   0x7   : > { %p110_p2 = scmp.eq.s32.totalorder %s739_s15, 1  ;;  %p115_p3 = scmp.ne.s32.totalorder %s946_s10, %s942_s9 }
   0x8   : > { %s1233_s17 = smov (%p32_p0, %s30_s17), 0  ;;  %p116_p5 = scmp.eq.s32.totalorder %s740_s16, 1 }
   0x9   : > { %p1022_p4 = por %p110_p2, %p109_p1  ;;  %s95_s20 = ssub.s32 %s958_s13, %s1233_s17 }
   0xa   : > { %p744_p6 = scmp.ge.s32.totalorder %s962_s14, 1  ;;  %p97_p7 = scmp.eq.s32.totalorder %s95_s20, 0 }
   0xb   : > { %p1029_p8 = por %p116_p5, %p115_p3  ;;  %p158_p9 = scmp.lt.s32.totalorder %s962_s14, 3 }
   0xc   : > { %s1035_s22 = scalar_select %p97_p7, %s950_s11, %s99_s18  }
   0xd   : > { %p159_p10 = pnand %p744_p6, %p158_p9 }
   0xe   : > { %s746_s23 = sshll.u32 (!%p159_p10), %s954_s12, 6  ;;  %s188_s4 = sand.u32 (!%p159_p10), 1, %s946_s10  }
   0xf   : > { %162 = sbr.rel (%p159_p10) target bundleno = 233 (0xe9), region = 28  ;;  %p201_p11 = scmp.lt.s32.totalorder (!%p159_p10), %s746_s23, 127 }
  0x10   : > { %s745_s5 = sshll.u32 (!%p159_p10), %s188_s4, 6  ;;  %s825_s7 = sshll.u32 (!%p159_p10), %s954_s12, 5 }
  0x11   : > { %s190_s6 = scalar_lea.vmem (!%p159_p10), [#allocation3], %s745_s5  ;;  %s638_s16 = scalar_lea.hbm (!%p159_p10), %s1224_s2, %s825_s7 }
  0x12   : > { %s639_s18 = sshll.u32 (!%p159_p10), %s190_s6, 4  ;;  %s641_s20 = sshll.u32 (!%p159_p10), %s638_s16, 4  ;;  %s640_s18 = int_to_ptr.vmem [resolvable:$true] %s639_s18  ;;  %s642_s20 = int_to_ptr.hbm [resolvable:$true] %s641_s20 }
  0x13   : > { %s624_s12 = scalar_lea.sflag (!%p159_p10), [#allocation4], %s188_s4 }
  0x14   : > { %s1235_s23 = smov (!%p201_p11, %s746_s23), 127  ;;  %vm297_vm0 = vcmask 261120  }
  0x15   : > { %s747_s24 = sshll.u32 %s1235_s23, 3  ;;  %s898_s23 = sshra.s32 %s642_s20, 4  ;;  %s899_s23 = int_to_ptr.hbm [resolvable:$true] %s898_s23 }
  0x16   : > { %s1041_s27 = scalar_lea.vmem %s1223_s1, %s747_s24  ;;  %s900_s24 = scalar_lea.hbm %s899_s23, 64 }
  0x17   : > { %v272_v0 = vld [vmem:[%s1041_s27 + $0x178] sm:$0xff]  ;;  %v271_v4 = vld [vmem:[%s1041_s27 + $0x170] sm:$0xff]  ;;  %v270_v8 = vld [vmem:[%s1041_s27 + $0x168] sm:$0xff]  ;;  %p901_p12 = scmp.ne.s32.totalorder %s899_s23, %s900_s24  ;;  %p905_p1 = scmp.lt.s32.totalorder %s899_s23, %s1224_s2 }
  0x18   : > { %v288_v1 = vld [vmem:[%s1041_s27 + $0x1f8] sm:$0xff]  ;;  %784 = vmatpush.xpose.msk.msra.mxu2 %vm297_vm0, %v272_v0  ;;  %v287_v5 = vld [vmem:[%s1041_s27 + $0x1f0] sm:$0xff]  ;;  %v286_v9 = vld [vmem:[%s1041_s27 + $0x1e8] sm:$0xff] }
  0x19   : > { %802 = vmatpush.xpose.msk.msra.mxu3 %vm297_vm0, %v288_v1  ;;  %v240_v2 = vld [vmem:[%s1041_s27 + $0x78] sm:$0xff]  ;;  %v239_v6 = vld [vmem:[%s1041_s27 + $0x70] sm:$0xff]  ;;  %v238_v10 = vld [vmem:[%s1041_s27 + $0x68] sm:$0xff]  ;;  %p902_p13 = pnand %p901_p12, %p1022_p4 }
  0x1a   : > { %v256_v3 = vld [vmem:[%s1041_s27 + $0xf8] sm:$0xff]  ;;  %748 = vmatpush.xpose.msk.msra.mxu0 %vm297_vm0, %v240_v2  ;;  %v255_v7 = vld [vmem:[%s1041_s27 + $0xf0] sm:$0xff]  ;;  %v254_v11 = vld [vmem:[%s1041_s27 + $0xe8] sm:$0xff] }
  0x1b   : > { %766 = vmatpush.xpose.msk.msra.mxu1 %vm297_vm0, %v256_v3  ;;  %v269_v12 = vld [vmem:[%s1041_s27 + $0x160] sm:$0xff]  ;;  %v268_v16 = vld [vmem:[%s1041_s27 + $0x158] sm:$0xff]  ;;  %v267_v20 = vld [vmem:[%s1041_s27 + $0x150] sm:$0xff]  ;;  %p903_p0 = pneg %p902_p13 }
  0x1c   : > { %785 = vmatpush.xpose.msk.msra.mxu2 %vm297_vm0, %v271_v4  ;;  %v285_v13 = vld [vmem:[%s1041_s27 + $0x1e0] sm:$0xff]  ;;  %v284_v17 = vld [vmem:[%s1041_s27 + $0x1d8] sm:$0xff]  ;;  %v283_v21 = vld [vmem:[%s1041_s27 + $0x1d0] sm:$0xff] }
  0x1d   : > { %803 = vmatpush.xpose.msk.msra.mxu3 %vm297_vm0, %v287_v5  ;;  %v237_v14 = vld [vmem:[%s1041_s27 + $0x60] sm:$0xff]  ;;  %v236_v18 = vld [vmem:[%s1041_s27 + $0x58] sm:$0xff]  ;;  %v235_v22 = vld [vmem:[%s1041_s27 + $0x50] sm:$0xff] }
  0x1e   : > { %749 = vmatpush.xpose.msk.msra.mxu0 %vm297_vm0, %v239_v6  ;;  %v253_v15 = vld [vmem:[%s1041_s27 + $0xe0] sm:$0xff]  ;;  %v252_v19 = vld [vmem:[%s1041_s27 + $0xd8] sm:$0xff]  ;;  %v251_v23 = vld [vmem:[%s1041_s27 + $0xd0] sm:$0xff] }
  0x1f   : > { %767 = vmatpush.xpose.msk.msra.mxu1 %vm297_vm0, %v255_v7  ;;  %v266_v24 = vld [vmem:[%s1041_s27 + $0x148] sm:$0xff]  ;;  %v265_v28 = vld [vmem:[%s1041_s27 + $0x140] sm:$0xff]  ;;  %v264_v32 = vld [vmem:[%s1041_s27 + $0x138] sm:$0xff] }
  0x20   : > { %786 = vmatpush.xpose.msk.msra.mxu2 %vm297_vm0, %v270_v8  ;;  %v282_v25 = vld [vmem:[%s1041_s27 + $0x1c8] sm:$0xff]  ;;  %v281_v29 = vld [vmem:[%s1041_s27 + $0x1c0] sm:$0xff]  ;;  %v280_v33 = vld [vmem:[%s1041_s27 + $0x1b8] sm:$0xff] }
  0x21   : > { %804 = vmatpush.xpose.msk.msra.mxu3 %vm297_vm0, %v286_v9  ;;  %v234_v26 = vld [vmem:[%s1041_s27 + $0x48] sm:$0xff]  ;;  %v233_v30 = vld [vmem:[%s1041_s27 + $0x40] sm:$0xff]  ;;  %v232_v34 = vld [vmem:[%s1041_s27 + $0x38] sm:$0xff] }
  0x22   : > { %750 = vmatpush.xpose.msk.msra.mxu0 %vm297_vm0, %v238_v10  ;;  %v250_v27 = vld [vmem:[%s1041_s27 + $0xc8] sm:$0xff]  ;;  %v249_v31 = vld [vmem:[%s1041_s27 + $0xc0] sm:$0xff]  ;;  %v248_v35 = vld [vmem:[%s1041_s27 + $0xb8] sm:$0xff] }
  0x23   : > { %768 = vmatpush.xpose.msk.msra.mxu1 %vm297_vm0, %v254_v11  ;;  %v263_v36 = vld [vmem:[%s1041_s27 + $0x130] sm:$0xff]  ;;  %v262_v40 = vld [vmem:[%s1041_s27 + $0x128] sm:$0xff]  ;;  %v261_v44 = vld [vmem:[%s1041_s27 + $0x120] sm:$0xff] }
  0x24   : > { %787 = vmatpush.xpose.msk.msra.mxu2 %vm297_vm0, %v269_v12  ;;  %v279_v37 = vld [vmem:[%s1041_s27 + $0x1b0] sm:$0xff]  ;;  %v278_v41 = vld [vmem:[%s1041_s27 + $0x1a8] sm:$0xff]  ;;  %v277_v45 = vld [vmem:[%s1041_s27 + $0x1a0] sm:$0xff] }
  0x25   : > { %805 = vmatpush.xpose.msk.msra.mxu3 %vm297_vm0, %v285_v13  ;;  %v231_v38 = vld [vmem:[%s1041_s27 + $0x30] sm:$0xff]  ;;  %v230_v42 = vld [vmem:[%s1041_s27 + $0x28] sm:$0xff]  ;;  %v229_v46 = vld [vmem:[%s1041_s27 + $0x20] sm:$0xff] }
  0x26   : > { %751 = vmatpush.xpose.msk.msra.mxu0 %vm297_vm0, %v237_v14  ;;  %v247_v39 = vld [vmem:[%s1041_s27 + $0xb0] sm:$0xff]  ;;  %v246_v43 = vld [vmem:[%s1041_s27 + $0xa8] sm:$0xff]  ;;  %v245_v47 = vld [vmem:[%s1041_s27 + $0xa0] sm:$0xff] }
  0x27   : > { %769 = vmatpush.xpose.msk.msra.mxu1 %vm297_vm0, %v253_v15  ;;  %v260_v48 = vld [vmem:[%s1041_s27 + $0x118] sm:$0xff]  ;;  %v259_v52 = vld [vmem:[%s1041_s27 + $0x110] sm:$0xff]  ;;  %v258_v56 = vld [vmem:[%s1041_s27 + $0x108] sm:$0xff] }
  0x28   : > { %788 = vmatpush.xpose.msk.msra.mxu2 %vm297_vm0, %v268_v16  ;;  %v276_v49 = vld [vmem:[%s1041_s27 + $0x198] sm:$0xff]  ;;  %v275_v53 = vld [vmem:[%s1041_s27 + $0x190] sm:$0xff]  ;;  %v274_v57 = vld [vmem:[%s1041_s27 + $0x188] sm:$0xff] }
  0x29   : > { %806 = vmatpush.xpose.msk.msra.mxu3 %vm297_vm0, %v284_v17  ;;  %v228_v50 = vld [vmem:[%s1041_s27 + $0x18] sm:$0xff]  ;;  %v227_v54 = vld [vmem:[%s1041_s27 + $0x10] sm:$0xff]  ;;  %v226_v58 = vld [vmem:[%s1041_s27 + $0x8] sm:$0xff] }
  0x2a   : > { %752 = vmatpush.xpose.msk.msra.mxu0 %vm297_vm0, %v236_v18  ;;  %v244_v51 = vld [vmem:[%s1041_s27 + $0x98] sm:$0xff]  ;;  %v243_v55 = vld [vmem:[%s1041_s27 + $0x90] sm:$0xff]  ;;  %v242_v59 = vld [vmem:[%s1041_s27 + $0x88] sm:$0xff] }
  0x2b   : > { %770 = vmatpush.xpose.msk.msra.mxu1 %vm297_vm0, %v252_v19  ;;  %v257_v60 = vld [vmem:[%s1041_s27 + $0x100] sm:$0xff]  ;;  %v224_v1 = vld [vmem:[%s1222_s0 + $0x8] sm:$0xff] }
  0x2c   : > { %789 = vmatpush.xpose.msk.msra.mxu2 %vm297_vm0, %v267_v20  ;;  %v273_v61 = vld [vmem:[%s1041_s27 + $0x180] sm:$0xff] }
  0x2d   : > { %807 = vmatpush.xpose.msk.msra.mxu3 %vm297_vm0, %v283_v21  ;;  %v225_v62 = vld [vmem:[%s1041_s27] sm:$0xff] }
  0x2e   : > { %753 = vmatpush.xpose.msk.msra.mxu0 %vm297_vm0, %v235_v22  ;;  %v241_v63 = vld [vmem:[%s1041_s27 + $0x80] sm:$0xff]  ;;  %s904_s27 = scalar_lea.hbm %s1224_s2, 128 }
  0x2f   : > { %771 = vmatpush.xpose.msk.msra.mxu1 %vm297_vm0, %v251_v23  ;;  %v223_v0 = vld [vmem:[%s1222_s0] sm:$0xff]  ;;  %p906_p2 = scmp.lt.s32.totalorder %s904_s27, %s900_s24 }
  0x30   : > { %790 = vmatpush.xpose.msk.msra.mxu2 %vm297_vm0, %v266_v24 }
  0x31   : > { %808 = vmatpush.xpose.msk.msra.mxu3 %vm297_vm0, %v282_v25  ;;  %p907_p3 = por %p906_p2, %p905_p1 }
  0x32   : > { %754 = vmatpush.xpose.msk.msra.mxu0 %vm297_vm0, %v234_v26 }
  0x33   : > { %772 = vmatpush.xpose.msk.msra.mxu1 %vm297_vm0, %v250_v27  ;;  %p908_p5 = pnand %p907_p3, %p903_p0 }
  0x34   : > { %791 = vmatpush.xpose.msk.msra.mxu2 %vm297_vm0, %v265_v28 }
  0x35   : > { %809 = vmatpush.xpose.msk.msra.mxu3 %vm297_vm0, %v281_v29 }
  0x36   : > { %755 = vmatpush.xpose.msk.msra.mxu0 %vm297_vm0, %v233_v30 }
  0x37   : > { %773 = vmatpush.xpose.msk.msra.mxu1 %vm297_vm0, %v249_v31 }
  0x38   : > { %792 = vmatpush.xpose.msk.msra.mxu2 %vm297_vm0, %v264_v32 }
  0x39   : > { %810 = vmatpush.xpose.msk.msra.mxu3 %vm297_vm0, %v280_v33 }
  0x3a   : > { %756 = vmatpush.xpose.msk.msra.mxu0 %vm297_vm0, %v232_v34 }
  0x3b   : > { %774 = vmatpush.xpose.msk.msra.mxu1 %vm297_vm0, %v248_v35 }
  0x3c   : > { %793 = vmatpush.xpose.msk.msra.mxu2 %vm297_vm0, %v263_v36 }
  0x3d   : > { %811 = vmatpush.xpose.msk.msra.mxu3 %vm297_vm0, %v279_v37 }
  0x3e   : > { %757 = vmatpush.xpose.msk.msra.mxu0 %vm297_vm0, %v231_v38 }
  0x3f   : > { %775 = vmatpush.xpose.msk.msra.mxu1 %vm297_vm0, %v247_v39 }
  0x40   : > { %794 = vmatpush.xpose.msk.msra.mxu2 %vm297_vm0, %v262_v40 }
  0x41   : > { %812 = vmatpush.xpose.msk.msra.mxu3 %vm297_vm0, %v278_v41 }
  0x42   : > { %758 = vmatpush.xpose.msk.msra.mxu0 %vm297_vm0, %v230_v42 }
  0x43   : > { %776 = vmatpush.xpose.msk.msra.mxu1 %vm297_vm0, %v246_v43 }
  0x44   : > { %795 = vmatpush.xpose.msk.msra.mxu2 %vm297_vm0, %v261_v44 }
  0x45   : > { %813 = vmatpush.xpose.msk.msra.mxu3 %vm297_vm0, %v277_v45 }
  0x46   : > { %759 = vmatpush.xpose.msk.msra.mxu0 %vm297_vm0, %v229_v46 }
  0x47   : > { %777 = vmatpush.xpose.msk.msra.mxu1 %vm297_vm0, %v245_v47 }
  0x48   : > { %796 = vmatpush.xpose.msk.msra.mxu2 %vm297_vm0, %v260_v48 }
  0x49   : > { %814 = vmatpush.xpose.msk.msra.mxu3 %vm297_vm0, %v276_v49 }
  0x4a   : > { %760 = vmatpush.xpose.msk.msra.mxu0 %vm297_vm0, %v228_v50 }
  0x4b   : > { %778 = vmatpush.xpose.msk.msra.mxu1 %vm297_vm0, %v244_v51 }
  0x4c   : > { %797 = vmatpush.xpose.msk.msra.mxu2 %vm297_vm0, %v259_v52 }
  0x4d   : > { %815 = vmatpush.xpose.msk.msra.mxu3 %vm297_vm0, %v275_v53 }
  0x4e   : > { %761 = vmatpush.xpose.msk.msra.mxu0 %vm297_vm0, %v227_v54 }
  0x4f   : > { %779 = vmatpush.xpose.msk.msra.mxu1 %vm297_vm0, %v243_v55 }
  0x50   : > { %798 = vmatpush.xpose.msk.msra.mxu2 %vm297_vm0, %v258_v56 }
  0x51   : > { %816 = vmatpush.xpose.msk.msra.mxu3 %vm297_vm0, %v274_v57 }
  0x52   : > { %762 = vmatpush.xpose.msk.msra.mxu0 %vm297_vm0, %v226_v58 }
  0x53   : > { %780 = vmatpush.xpose.msk.msra.mxu1 %vm297_vm0, %v242_v59 }
  0x54   : > { %799 = vmatpush.xpose.msk.msra.mxu2 %vm297_vm0, %v257_v60 }
  0x55   : > { %817 = vmatpush.xpose.msk.msra.mxu3 %vm297_vm0, %v273_v61 }
  0x56   : > { %763 = vmatpush.xpose.msk.msra.mxu0 %vm297_vm0, %v225_v62 }
  0x57   : > { %781 = vmatpush.xpose.msk.msra.mxu1 %vm297_vm0, %v241_v63  ;;  %800 = vmatmul.msk.f32.vlgmr.msra.gmra.mxu2 %vm297_vm0, %v223_v0 }
  0x58   : > { %818 = vmatmul.msk.f32.vlgmr.msra.gmra.mxu3 %vm297_vm0, %v223_v0 }
  0x59   : > { %764 = vmatmul.msk.f32.vlgmr.msra.gmra.mxu0 %vm297_vm0, %v223_v0 }
  0x5a   : > { %782 = vmatmul.msk.f32.vlgmr.msra.gmra.mxu1 %vm297_vm0, %v223_v0 }
  0x5f   : > { %801 = vmatmul.msk.f32.gmra.mxu2 %vm297_vm0, %v224_v1 }
  0x60   : > { %819 = vmatmul.msk.f32.gmra.mxu3 %vm297_vm0, %v224_v1 }
  0x61   : > { %765 = vmatmul.msk.f32.gmra.mxu0 %vm297_vm0, %v224_v1 }
  0x62   : > { %783 = vmatmul.msk.f32.gmra.mxu1 %vm297_vm0, %v224_v1 }
  0xd6   : > { %v513_v2 = vpop.f32.mrf.mxu0 }
  0xd7   : > { %v536_v3 = vpop.f32.mrf.mxu1  ;;  %615 = vst [vmem:[%s190_s6] sm:$0xff] %v513_v2 }
  0xd8   : > { %616 = vst [vmem:[%s190_s6 + $0x8] sm:$0xff] %v536_v3 }
  0xda   : > { %v559_v4 = vpop.f32.mrf.mxu2 }
  0xdb   : > { %v582_v5 = vpop.f32.mrf.mxu3  ;;  %617 = vst [vmem:[%s190_s6 + $0x10] sm:$0xff] %v559_v4 }
  0xdc   : > { %618 = vst [vmem:[%s190_s6 + $0x18] sm:$0xff] %v582_v5 }
  0xde   : > { %v516_v6 = vpop.f32.mrf.mxu0 }
  0xdf   : > { %v539_v7 = vpop.f32.mrf.mxu1  ;;  %619 = vst [vmem:[%s190_s6 + $0x20] sm:$0xff] %v516_v6 }
  0xe0   : > { %620 = vst [vmem:[%s190_s6 + $0x28] sm:$0xff] %v539_v7 }
  0xe2   : > { %v562_v8 = vpop.f32.mrf.mxu2 }
  0xe3   : > { %v585_v9 = vpop.f32.mrf.mxu3  ;;  %621 = vst [vmem:[%s190_s6 + $0x30] sm:$0xff] %v562_v8 }
  0xe4   : > { %622 = vst [vmem:[%s190_s6 + $0x38] sm:$0xff] %v585_v9 }
  0xe5   : > { %911 = shalt.err (!%p908_p5)
}
  0xe6   : > { %s964_s30 = smov 512   ;;  %s965_s3 = smov 1024  }
  0xe7   : > { %s966_s4 = smov 32  }
  0xe8   : > { %826 = dma.vmem_to_hbm [thread:$0]  (%p1022_p4), %s640_s18, 1024, %s642_s20, %s624_s12, %s964_s30, %s965_s3, %s966_s4  }
  0xe9 PF: > { %p832_p6 = scmp.ge.s32.totalorder %s962_s14, 2  ;;  %s656_s5 = sand.u32 1, %s942_s9  }
  0xea   : > { %s657_s6 = scalar_lea.sflag [#allocation4], %s656_s5 }
  0xeb   : > { %p829_p7 = pnand %p832_p6, %p1029_p8 }
  0xed   : > { %p830_p9 = pneg %p829_p7 }
  0xef   : > { %937 = dma.done.wait (%p830_p9), %s657_s6, 1024  }
  0xf0   : > { %939 = vsyncadd (%p830_p9), %s657_s6, 4294966272  ;;  %s15_s14 = sadd.s32 1, %s962_s14   ;;  %s1227_s9 = smov %s946_s10 }
  0xf1   : > { %p12_p10 = scmp.ge.s32.totalorder %s15_s14, 4   ;;  %s1228_s10 = smov %s950_s11 }
  0xf2   : > { %s1229_s11 = smov %s1035_s22  ;;  %s1230_s12 = smov %s958_s13 }
  0xf3   : > { %s1231_s13 = smov %s1233_s17  ;;  %14 = sbr.rel (!%p12_p10) target bundleno = 4 (0x4), region = 74 }
  0xf8   :  { %663 = vsyncpa [#allocation4], 1 }
  0xf9   :  { %665 = vsyncpa [#allocation4 + $0x1], 1 }

</bundles_post_ra>
